<compile_context>
chip_gen: v7x
topology: tpu7x:2x2x1
jax: 0.10.0
libtpu: 0.0.40
codegen_flags: <defaults>
</compile_context>

<pallas_src>
import functools
import math

import jax
import jax.numpy as jnp
from jax import lax
from jax.experimental import pallas as pl
from jax.experimental.pallas import tpu as pltpu


# ----------------------------------------------------------------------------
# Tuning knobs
# ----------------------------------------------------------------------------

_OUT_BLOCK_TARGET = 6 << 20   # ~6 MiB output blocks (review: 4-8 MiB)
_E_CAP_BYTES = 2 << 20        # max bytes for the one-hot expansion matrix
_K_CAP_FOLD = 256             # max matmul contraction in the row-fold path
_MIN_VMEM_LIMIT = 24 << 20


def _cdiv(a, b):
    return -(-a // b)


def _sublane(itemsize):
    # Rows per sublane tile: 8 for 4-byte, 16 for 2-byte, 32 for 1-byte dtypes.
    return max(8, 32 // max(1, itemsize))


@functools.lru_cache(maxsize=None)
def _vmem_limit_cap():
    cap = 64 << 20  # conservative default: v7x per-TensorCore VMEM
    try:
        cap = int(pltpu.get_tpu_info().vmem_capacity_bytes)
    except Exception:
        pass
    return min(48 << 20, max(_MIN_VMEM_LIMIT, (3 * cap) // 4))


def _vmem_limit(block_bytes):
    # Double-buffered blocks + headroom for Mosaic internal scratch.
    need = 2 * block_bytes + (8 << 20)
    return int(min(max(need, _MIN_VMEM_LIMIT), _vmem_limit_cap()))


def _compute_setup(dtype):
    """(matmul compute dtype, MXU precision) chosen so the one-hot copy is exact."""
    if jnp.dtype(dtype) == jnp.dtype(jnp.bfloat16):
        # bf16 * {0,1} with a single f32-accumulated term is exact; DEFAULT
        # precision avoids the 6-pass HIGHEST expansion (review: v5e).
        return jnp.bfloat16, lax.Precision.DEFAULT
    # f32 uses the exact HIGHEST path; f16 / integer / bool inputs are routed
    # through f32 (exact for f16 and for integer magnitudes below 2**24).
    # TODO(synk): int32/float64 values with magnitude >= 2**24 would lose
    # precision on this MXU copy path; they would need a pure-VPU copy kernel.
    return jnp.float32, lax.Precision.HIGHEST


# ----------------------------------------------------------------------------
# Expansion matrix + Pallas kernel
# ----------------------------------------------------------------------------

def _expansion_matrix(g, w, sh, sw, dtype):
    """One-hot (g*w, g*sh*w*sw) expansion matrix.

    Treating g flattened input rows of width w as one lane vector, output
    column q copies input column (q // (sh*w*sw)) * w + (q % (w*sw)) // sw,
    i.e. each of the g rows is repeated sh times and every element sw times.
    """
    q = jnp.arange(g * sh * w * sw, dtype=jnp.int32)
    src = (q // (sh * w * sw)) * w + (q % (w * sw)) // sw
    return (src[None, :] == jnp.arange(g * w, dtype=jnp.int32)[:, None]).astype(dtype)


def _expand_kernel(x_ref, e_ref, o_ref, *, panels, precision):
    """o[:, p*kout:(p+1)*kout] = x[:, p*kin:(p+1)*kin] @ E  for each panel p.

    E is 0/1 with exactly one nonzero per output column, so the MXU matmul is
    an exact element copy (the dual-axis nearest-neighbour repeat).
    """
    kin, kout = e_ref.shape
    e = e_ref[...]
    for p in range(panels):
        xp = x_ref[:, p * kin:(p + 1) * kin]
        if x_ref.dtype != e.dtype:
            xp = xp.astype(e.dtype)
        o_ref[:, p * kout:(p + 1) * kout] = jnp.dot(
            xp, e, precision=precision,
            preferred_element_type=jnp.float32,
        ).astype(o_ref.dtype)


# ----------------------------------------------------------------------------
# Tiling / planning helpers
# ----------------------------------------------------------------------------

def _pick_row_tile(rows, out_row_bytes, subl, want_two_blocks):
    tr = (_OUT_BLOCK_TARGET // max(out_row_bytes, 1)) // subl * subl
    tr = max(tr, subl)
    if want_two_blocks and rows >= 2 * subl:
        # Guarantee >=2 row blocks so v7x's two TensorCores both get work.
        half = _cdiv(_cdiv(rows, 2), subl) * subl
        tr = min(tr, half)
    return min(tr, rows)


def _plan(r, w, sh, sw, dtype):
    """Pick a tiling strategy: ("split", tw) | ("fold", g) | ("pad", w_pad)."""
    cdtype, _ = _compute_setup(dtype)
    e_isz = jnp.dtype(cdtype).itemsize

    if w % 128 == 0:
        return "split", 128
    if (w * sw) % 128 == 0 and w * (w * sw) * e_isz <= _E_CAP_BYTES:
        return "split", w   # full-width tile; output panels stay 128-aligned

    # Row-fold path: group g flattened rows so the full-width output block is a
    # multiple of 128 lanes.  The smallest lane-dense g keeps the matmul
    # contraction (g*w) tiny, so the copy stays far under the HBM roofline.
    lane_g = 128 // math.gcd(sh * w * sw, 128)
    g = lane_g
    while g <= r and g * w <= _K_CAP_FOLD:
        if r % g == 0 and (g * w) * (g * sh * w * sw) * e_isz <= _E_CAP_BYTES:
            return "fold", g
        g += lane_g

    # No lane-dense grouping divides the row count: largest divisor of r within
    # the caps (possibly masked trailing lanes; only hit for tiny/odd shapes).
    for g in range(min(r, _K_CAP_FOLD // w), 0, -1):
        if r % g == 0 and (g * w) * (g * sh * w * sw) * e_isz <= _E_CAP_BYTES:
            return "fold", g

    # Pathological large non-128-aligned W: pad W up to a multiple of 128 and
    # use the split path (bounded VMEM instead of an O(W^2) expansion matrix).
    # TODO(synk): the pad + output-column slice cost one extra pass over the
    # data; a dedicated width-remainder kernel would avoid it.
    return "pad", _cdiv(w, 128) * 128


# ----------------------------------------------------------------------------
# pallas_call runners
# ----------------------------------------------------------------------------

def _run_split(x2, w, sh, sw, tw):
    """Width-tiled path: tw == 128 (when 128 | W) or tw == W with W*sw a
    multiple of 128, so every output block is lane dense."""
    rows = x2.shape[0]
    isz = x2.dtype.itemsize
    subl = _sublane(isz)
    cdtype, precision = _compute_setup(x2.dtype)

    nw = w // tw
    # Fold up to 8 width tiles into one block: wider contiguous writebacks and
    # fewer grid steps while the matmul contraction stays at tw.
    cw = 1
    for d in range(min(nw, 8), 0, -1):
        if nw % d == 0:
            cw = d
            break
    nwo = nw // cw

    e = _expansion_matrix(1, tw, 1, sw, cdtype)
    blk_in, blk_out = cw * tw, cw * tw * sw
    out_cols = sh * w * sw

    tr = _pick_row_tile(rows, blk_out * isz, subl,
                        want_two_blocks=(nwo * sh == 1))
    nr = _cdiv(rows, tr)

    block_bytes = (tr * blk_in + tr * blk_out) * isz + e.size * e.dtype.itemsize
    cost = pl.CostEstimate(
        flops=int(2 * rows * sh * w * sw * tw),
        transcendentals=0,
        bytes_accessed=int((rows * w + rows * out_cols) * isz),
    )

    return pl.pallas_call(
        functools.partial(_expand_kernel, panels=cw, precision=precision),
        out_shape=jax.ShapeDtypeStruct((rows, out_cols), x2.dtype),
        grid=(nr, nwo, sh),
        in_specs=[
            pl.BlockSpec((tr, blk_in), lambda ri, wo, si: (ri, wo)),
            pl.BlockSpec((tw, tw * sw), lambda ri, wo, si: (0, 0)),
        ],
        out_specs=pl.BlockSpec(
            (tr, blk_out), lambda ri, wo, si, _n=nwo: (ri, si * _n + wo)),
        compiler_params=pltpu.CompilerParams(
            dimension_semantics=("parallel", "parallel", "parallel"),
            vmem_limit_bytes=_vmem_limit(block_bytes)),
        cost_estimate=cost,
    )(x2, e)


def _run_fold(x2, w, sh, sw, g):
    """Row-fold path: g flattened input rows become one lane vector, so the
    (full-width) output block is lane dense and every writeback is one
    contiguous HBM region."""
    rows = x2.shape[0] // g
    x3 = x2.reshape(rows, g * w)          # contiguous view: free
    isz = x2.dtype.itemsize
    subl = _sublane(isz)
    cdtype, precision = _compute_setup(x2.dtype)

    e = _expansion_matrix(g, w, sh, sw, cdtype)
    kin, kout = e.shape

    tr = _pick_row_tile(rows, kout * isz, subl, want_two_blocks=True)
    nr = _cdiv(rows, tr)

    block_bytes = (tr * kin + tr * kout) * isz + e.size * e.dtype.itemsize
    cost = pl.CostEstimate(
        flops=int(2 * rows * kin * kout),
        transcendentals=0,
        bytes_accessed=int(rows * (kin + kout) * isz),
    )

    return pl.pallas_call(
        functools.partial(_expand_kernel, panels=1, precision=precision),
        out_shape=jax.ShapeDtypeStruct((rows, kout), x2.dtype),
        grid=(nr,),
        in_specs=[
            pl.BlockSpec((tr, kin), lambda ri: (ri, 0)),
            pl.BlockSpec((kin, kout), lambda ri: (0, 0)),
        ],
        out_specs=pl.BlockSpec((tr, kout), lambda ri: (ri, 0)),
        compiler_params=pltpu.CompilerParams(
            dimension_semantics=("parallel",),
            vmem_limit_bytes=_vmem_limit(block_bytes)),
        cost_estimate=cost,
    )(x3, e)


# ----------------------------------------------------------------------------
# Public wrapper
# ----------------------------------------------------------------------------

def _normalize_scale(scale_factor):
    if isinstance(scale_factor, (tuple, list)):
        vals = tuple(scale_factor)
        if len(vals) == 1:
            vals = (vals[0], vals[0])
        sh, sw = vals
    else:
        sh = sw = scale_factor
    sh_i, sw_i = int(sh), int(sw)
    # TODO(synk): PyTorch nearest also accepts non-integer scale factors; only
    # positive integer scales are implemented here.
    if sh_i != sh or sw_i != sw or sh_i < 1 or sw_i < 1:
        raise NotImplementedError(
            "only positive integer scale factors are supported")
    return sh_i, sw_i


@functools.partial(jax.jit, static_argnames=("scale_factor",))
def interpolate_nearest(x, scale_factor=2):
    """(N, C, H, W) -> (N, C, H*sh, W*sw) nearest-neighbour upsampling."""
    sh, sw = _normalize_scale(scale_factor)
    n, c, h, w = x.shape
    if sh == 1 and sw == 1:
        return x

    r = n * c * h
    x2 = x.reshape(r, w)                                   # contiguous: free
    kind, arg = _plan(r, w, sh, sw, x.dtype)

    if kind == "fold":
        out = _run_fold(x2, w, sh, sw, arg)                # (r/g, g*sh*w*sw)
        return out.reshape(n, c, h * sh, w * sw)           # contiguous: free
    if kind == "split":
        out = _run_split(x2, w, sh, sw, arg)               # (r, sh*w*sw)
        return out.reshape(n, c, h * sh, w * sw)           # contiguous: free

    # "pad": rare large odd-W fallback.
    w_pad = arg
    x2p = jnp.pad(x2, ((0, 0), (0, w_pad - w)))
    out = _run_split(x2p, w_pad, sh, sw, 128)              # (r, sh*w_pad*sw)
    out = out.reshape(r * sh, w_pad * sw)[:, : w * sw]
    return out.reshape(n, c, h * sh, w * sw)


class Interpolate:
    """JAX/Pallas equivalent of the PyTorch Interpolate module (mode='nearest')."""

    def __init__(self, scale_factor):
        if isinstance(scale_factor, list):
            scale_factor = tuple(scale_factor)
        self.scale_factor = scale_factor
        self.mode = "nearest"

    def __call__(self, x):
        return interpolate_nearest(x, self.scale_factor)


# ----------------------------------------------------------------------------

if __name__ == "__main__":
    key = jax.random.PRNGKey(0)

    def _ref(x, sh, sw):
        return jnp.repeat(jnp.repeat(x, sh, axis=2), sw, axis=3)

    # 1) Main test: NCHW input consistent with the module, scale_factor=2
    #    (row-fold path: lane-dense 128-wide output blocks, 2 row blocks).
    x = jax.random.normal(key, (2, 4, 16, 16), dtype=jnp.float32)
    model = Interpolate(scale_factor=2)
    y = jax.block_until_ready(model(x))
    assert y.shape == (2, 4, 32, 32), y.shape
    assert y.dtype == jnp.float32
    assert bool(jnp.allclose(y, _ref(x, 2, 2), rtol=1e-6, atol=1e-6))
    assert bool(jnp.all(jnp.isfinite(y)))

    # 2) Lane-aligned split path (W*sw multiple of 128, sh replica grid axis).
    xb = jax.random.normal(jax.random.fold_in(key, 1), (1, 2, 8, 64), jnp.float32)
    yb = jax.block_until_ready(interpolate_nearest(xb, 2))
    assert yb.shape == (1, 2, 16, 128)
    assert bool(jnp.allclose(yb, _ref(xb, 2, 2), rtol=1e-6, atol=1e-6))

    # 3) Split path with several width tiles folded into one block (W=256).
    xc = jax.random.normal(jax.random.fold_in(key, 2), (1, 2, 8, 256), jnp.float32)
    yc = jax.block_until_ready(interpolate_nearest(xc, 2))
    assert yc.shape == (1, 2, 16, 512)
    assert bool(jnp.allclose(yc, _ref(xc, 2, 2), rtol=1e-6, atol=1e-6))

    # 4) Anisotropic integer scale factor (tiny shape, fold fallback).
    xd = jax.random.normal(jax.random.fold_in(key, 3), (1, 1, 4, 8), jnp.float32)
    yd = jax.block_until_ready(interpolate_nearest(xd, (3, 2)))
    assert yd.shape == (1, 1, 12, 16)
    assert bool(jnp.allclose(yd, _ref(xd, 3, 2), rtol=1e-6, atol=1e-6))

    # 5) Row count that does not divide the row tile (masked trailing rows).
    xe = jax.random.normal(jax.random.fold_in(key, 4), (1, 5, 12, 16), jnp.float32)
    ye = jax.block_until_ready(interpolate_nearest(xe, 2))
    assert ye.shape == (1, 5, 24, 32)
    assert bool(jnp.allclose(ye, _ref(xe, 2, 2), rtol=1e-6, atol=1e-6))

    # 6) bf16 input (DEFAULT-precision MXU path is still an exact copy).
    xf = jax.random.normal(jax.random.fold_in(key, 5), (2, 4, 16, 16)).astype(jnp.bfloat16)
    yf = jax.block_until_ready(interpolate_nearest(xf, 2))
    assert yf.dtype == jnp.bfloat16
    assert bool(jnp.allclose(yf.astype(jnp.float32),
                             _ref(xf, 2, 2).astype(jnp.float32),
                             rtol=1e-6, atol=1e-6))

    # 7) Large non-128-aligned W fallback (pad path, bounded VMEM).
    xg = jax.random.normal(jax.random.fold_in(key, 6), (1, 1, 4, 300), jnp.float32)
    yg = jax.block_until_ready(interpolate_nearest(xg, 2))
    assert yg.shape == (1, 1, 8, 600)
    assert bool(jnp.allclose(yg, _ref(xg, 2, 2), rtol=1e-6, atol=1e-6))

    print("KERNEL_OK")
</pallas_src>

<mosaic_0001>
module attributes {stable_mosaic.version = 11 : i64} {
  func.func @_expand_kernel(%arg0: i32, %arg1: memref<32x32xf32, #tpu.memory_space<vmem>>, %arg2: memref<32x128xf32, #tpu.memory_space<vmem>>, %arg3: memref<32x128xf32, #tpu.memory_space<vmem>>) attributes {dimension_semantics = [#tpu.dimension_semantics<parallel>], iteration_bounds = array<i64: 2>, scalar_prefetch = 0 : i64, scratch_operands = 0 : i64, tpu.core_type = #tpu.core_type<tc>, window_params = [{transform_indices = @transform_0, window_bounds = array<i64: 32, 32>}, {pipeline_mode = #tpu.pipeline_mode<synchronous>, transform_indices = @transform_1, window_bounds = array<i64: 32, 128>}, {transform_indices = @transform_2, window_bounds = array<i64: 32, 128>}]} {
    %c0 = arith.constant 0 : index
    %c0_0 = arith.constant 0 : index
    %0 = vector.load %arg2[%c0, %c0_0] : memref<32x128xf32, #tpu.memory_space<vmem>>, vector<32x128xf32>
    %c0_1 = arith.constant 0 : index
    %c0_2 = arith.constant 0 : index
    %1 = vector.load %arg1[%c0_1, %c0_2] : memref<32x32xf32, #tpu.memory_space<vmem>>, vector<32x32xf32>
    %cst = arith.constant dense<0.000000e+00> : vector<32x128xf32>
    %2 = tpu.matmul %1, %0, %cst {dimension_numbers = #tpu.dot_dimension_numbers<[1], [0], [0], [1], [0, 0, 1, 1], [], []>, precision = #tpu.contract_precision<fp32>} : vector<32x32xf32>, vector<32x128xf32>, vector<32x128xf32> -> vector<32x128xf32>
    %c0_3 = arith.constant 0 : index
    %c0_4 = arith.constant 0 : index
    %3 = vector.load %arg3[%c0_3, %c0_4] : memref<32x128xf32, #tpu.memory_space<vmem>>, vector<32x128xf32>
    tpu.vector_store %arg3[%c0_3, %c0_4], %2 {strides = array<i32>} : memref<32x128xf32, #tpu.memory_space<vmem>>, vector<32x128xf32>,
    return
  }
  func.func @transform_0(%arg0: i32) -> (i32, i32) {
    %c0_i32 = arith.constant 0 : i32
    %c0_i32_0 = arith.constant 0 : i32
    return %arg0, %c0_i32 : i32, i32
  }
  func.func @transform_1(%arg0: i32) -> (i32, i32) {
    %c0_i32 = arith.constant 0 : i32
    %c0_i32_0 = arith.constant 0 : i32
    %c0_i32_1 = arith.constant 0 : i32
    return %c0_i32, %c0_i32_0 : i32, i32
  }
  func.func @transform_2(%arg0: i32) -> (i32, i32) {
    %c0_i32 = arith.constant 0 : i32
    %c0_i32_0 = arith.constant 0 : i32
    return %arg0, %c0_i32 : i32, i32
  }
}

</mosaic_0001>

<bundles_post_ra>
// kernel: interpolate_nearest.1
= control target key start
LH: loop header
LB: loop body
LE: loop exit
PB: predicated region body
PF: predicated region fallthrough
CT: control target
= control target key end

     0   :  { %s1084_s9 = smov 0   ;;  %s1172_s0 = inlined_call_operand.vmem [shape: f32[64,32], index: 0, kind: input, shape index: {}]   ;;  %s1173_s1 = inlined_call_operand.vmem [shape: f32[32,128], index: 1, kind: input, shape index: {}]   ;;  %s1174_s2 = inlined_call_operand.vmem [shape: f32[64,128], index: 2, kind: output, shape index: {}]  }
   0x1 LB: > { %s842_s10 = sadd.s32 4294967295, %s1067_s9   ;;  %p846_p0 = scmp.ge.s32.totalorder %s1067_s9, 1  ;;  %s1067_s9 = sphi %s1084_s9, %s12_s9  }
   0x2   : > { %p113_p1 = scmp.lt.s32.totalorder %s1067_s9, 3 }
   0x4   : > { %p114_p2 = pnand %p846_p0, %p113_p1 }
   0x5   : > { %v147_v0 = vld [vmem:[%s1173_s1] sm:$0xff] (!%p114_p2)  ;;  %v148_v1 = vld [vmem:[%s1173_s1 + $0x8] sm:$0xff] (!%p114_p2)  ;;  %v149_v2 = vld [vmem:[%s1173_s1 + $0x10] sm:$0xff] (!%p114_p2)  ;;  %s847_s17 = sshll.u32 (!%p114_p2), %s842_s10, 2  ;;  %vm155_vm0 = vcmask (!%p114_p2), 261120  }
   0x6   : > { %117 = sbr.rel (%p114_p2) target bundleno = 265 (0x109), region = 28  ;;  %v169_v3 = vand.u32 (!%p114_p2), 4294901760, %v147_v0  ;;  %v172_v4 = vand.u32 (!%p114_p2), 4294901760, %v148_v1  ;;  %v150_v5 = vld [vmem:[%s1173_s1 + $0x18] sm:$0xff] (!%p114_p2)  ;;  %v175_v6 = vand.u32 (!%p114_p2), 4294901760, %v149_v2  ;;  %p136_p3 = scmp.lt.s32.totalorder (!%p114_p2), %s847_s17, 7 }
   0x7   : > { %v178_v7 = vand.u32 (!%p114_p2), 4294901760, %v150_v5 }
   0x8   : > { %v1104_v8 = vpack.c.bf16 (!%p114_p2), %v172_v4, %v169_v3  ;;  %v1108_v9 = vsub.f32 (!%p114_p2), %v147_v0, %v169_v3  ;;  %v1110_v10 = vsub.f32 (!%p114_p2), %v148_v1, %v172_v4  ;;  %v1112_v11 = vsub.f32 (!%p114_p2), %v149_v2, %v175_v6 }
   0x9   : > { %v1114_v12 = vpack.c.bf16 (!%p114_p2), %v178_v7, %v175_v6  ;;  %v1116_v13 = vsub.f32 (!%p114_p2), %v150_v5, %v178_v7 }
   0xa   : > { %1010 = vmatprep.subr.bf16.mxu0 (!%p114_p2), %v1104_v8  ;;  %986 = vmatprep.subr.bf16.mxu1 (!%p114_p2), %v1104_v8  ;;  %v280_v14 = vand.u32 (!%p114_p2), 4294901760, %v1108_v9  ;;  %v287_v15 = vand.u32 (!%p114_p2), 4294901760, %v1110_v10  ;;  %v294_v16 = vand.u32 (!%p114_p2), 4294901760, %v1112_v11  ;;  %v1001_v58 = vpack.c.bf16 (!%p114_p2), %v1110_v10, %v1108_v9 }
   0xb   : > { %1012 = vmatpush3.bf16.msra.mxu0 (!%p114_p2), %v1104_v8  ;;  %988 = vmatpush3.bf16.msra.mxu1 (!%p114_p2), %v1104_v8  ;;  %v301_v17 = vand.u32 (!%p114_p2), 4294901760, %v1116_v13  ;;  %v1005_v59 = vpack.c.bf16 (!%p114_p2), %v1116_v13, %v1112_v11 }
   0xc   : > { %1014 = vmatprep.subr.bf16.mxu0 (!%p114_p2), %v1114_v12  ;;  %990 = vmatprep.subr.bf16.mxu1 (!%p114_p2), %v1114_v12  ;;  %v1017_v20 = vpack.c.bf16 (!%p114_p2), %v287_v15, %v280_v14  ;;  %v281_v21 = vsub.f32 (!%p114_p2), %v1108_v9, %v280_v14  ;;  %v288_v22 = vsub.f32 (!%p114_p2), %v1110_v10, %v287_v15 }
   0xd   : > { %s1176_s17 = smov (!%p136_p3, %s847_s17), 7  ;;  %v295_v34 = vsub.f32 %v1112_v11, %v294_v16  ;;  %v302_v35 = vsub.f32 %v1116_v13, %v301_v17  ;;  %v1021_v45 = vpack.c.bf16 %v301_v17, %v294_v16 }
   0xe   : > { %s848_s20 = sshll.u32 %s1176_s17, 3  ;;  %v282_v30 = vand.u32 4294901760, %v281_v21  ;;  %v289_v31 = vand.u32 4294901760, %v288_v22 }
   0xf   : > { %s139_s23 = scalar_lea.vmem %s1172_s0, %s848_s20  ;;  %1016 = vmatpush3.bf16.msra.mxu0 %v1114_v12  ;;  %992 = vmatpush3.bf16.msra.mxu1 %v1114_v12  ;;  %v296_v46 = vand.u32 4294901760, %v295_v34  ;;  %v303_v47 = vand.u32 4294901760, %v302_v35  ;;  %s145_s26 = scalar_lea.vmem %s1174_s2, %s848_s20 }
  0x10   : > { %v151_v18 = vld [vmem:[%s139_s23] sm:$0xff]  ;;  %v152_v19 = vld [vmem:[%s139_s23 + $0x8] sm:$0xff]  ;;  %v153_v23 = vld [vmem:[%s139_s23 + $0x10] sm:$0xff]  ;;  %1018 = vmatprep.subr.bf16.mxu0 %v1017_v20  ;;  %v993_v38 = vpack.c.bf16 %v289_v31, %v282_v30 }
  0x11   : > { %v157_v24 = vsel %vm155_vm0, %v151_v18, 0  ;;  %v160_v25 = vsel %vm155_vm0, %v152_v19, 0  ;;  %v163_v26 = vsel %vm155_vm0, %v153_v23, 0  ;;  %v154_v27 = vld [vmem:[%s139_s23 + $0x18] sm:$0xff]  ;;  %v997_v56 = vpack.c.bf16 %v303_v47, %v296_v46 }
  0x12   : > { %v1139_v28 = vand.u32 4294901760, %v157_v24  ;;  %v1141_v29 = vand.u32 4294901760, %v160_v25  ;;  %v257_v32 = vand.u32 4294901760, %v163_v26  ;;  %v166_v33 = vsel %vm155_vm0, %v154_v27, 0  ;;  %994 = vmatprep.subr.bf16.mxu1 %v993_v38 }
  0x13   : > { %v267_v39 = vand.u32 4294901760, %v166_v33 }
  0x14   : > { %v238_v36 = vsub.f32 %v157_v24, %v1139_v28  ;;  %v248_v37 = vsub.f32 %v160_v25, %v1141_v29  ;;  %v258_v40 = vsub.f32 %v163_v26, %v257_v32 }
  0x15   : > { %v268_v43 = vsub.f32 %v166_v33, %v267_v39 }
  0x16   : > { %v239_v41 = vand.u32 4294901760, %v238_v36  ;;  %v249_v42 = vand.u32 4294901760, %v248_v37  ;;  %v259_v44 = vand.u32 4294901760, %v258_v40 }
  0x17   : > { %v269_v50 = vand.u32 4294901760, %v268_v43 }
  0x18   : > { %951 = vmatprep.mubr.f32.mxu0 %v239_v41  ;;  %v240_v48 = vsub.f32 %v238_v36, %v239_v41  ;;  %v250_v49 = vsub.f32 %v248_v37, %v249_v42  ;;  %v260_v51 = vsub.f32 %v258_v40, %v259_v44 }
  0x19   : > { %952 = vmatmul.mubr.f32.vlgmr.msra.gmra.mrb[0].mxu0 %v249_v42  ;;  %v270_v54 = vsub.f32 %v268_v43, %v269_v50 }
  0x1a   : > { %1020 = vmatpush3.bf16.msra.mxu0 %v1017_v20  ;;  %v241_v52 = vand.u32 4294901760, %v240_v48  ;;  %954 = vmatprep.mubr.f32.mxu0 %v259_v44  ;;  %v251_v53 = vand.u32 4294901760, %v250_v49  ;;  %v261_v55 = vand.u32 4294901760, %v260_v51 }
  0x1b   : > { %1022 = vmatprep.subr.bf16.mxu0 %v1021_v45  ;;  %v271_v57 = vand.u32 4294901760, %v270_v54 }
  0x1c   : > { %909 = vmatprep.mubr.f32.mxu1 %v241_v52 }
  0x1d   : > { %910 = vmatmul.mubr.f32.vlgmr.msra.gmra.mrb[0].mxu1 %v251_v53  ;;  %955 = vmatmul.mubr.f32.gmra.mrb[2].mxu0 %v269_v50 }
  0x1e   : > { %996 = vmatpush3.bf16.msra.mxu1 %v993_v38  ;;  %1024 = vmatpush3.bf16.msra.mxu0 %v1021_v45 }
  0x1f   : > { %912 = vmatprep.mubr.f32.mxu1 %v261_v55  ;;  %998 = vmatprep.subr.bf16.mxu1 %v997_v56 }
  0x20   : > { %965 = vmatprep.mubr.f32.mxu0 %v1139_v28  ;;  %1026 = vmatprep.subr.bf16.mxu0 %v1104_v8 }
  0x21   : > { %913 = vmatmul.mubr.f32.gmra.mrb[2].mxu1 %v271_v57  ;;  %966 = vmatmul.mubr.f32.vlgmr.msra.gmra.mrb[0].mxu0 %v1141_v29 }
  0x22   : > { %1000 = vmatpush3.bf16.msra.mxu1 %v997_v56  ;;  %1028 = vmatpush3.bf16.msra.mxu0 %v1104_v8 }
  0x23   : > { %923 = vmatprep.mubr.f32.mxu1 %v1139_v28  ;;  %1002 = vmatprep.subr.bf16.mxu1 %v1001_v58 }
  0x24   : > { %968 = vmatprep.mubr.f32.mxu0 %v257_v32  ;;  %1030 = vmatprep.subr.bf16.mxu0 %v1114_v12 }
  0x25   : > { %924 = vmatmul.mubr.f32.vlgmr.msra.gmra.mrb[0].mxu1 %v1141_v29  ;;  %969 = vmatmul.mubr.f32.gmra.mrb[2].mxu0 %v267_v39 }
  0x26   : > { %1004 = vmatpush3.bf16.msra.mxu1 %v1001_v58  ;;  %1032 = vmatpush3.bf16.msra.mxu0 %v1114_v12 }
  0x27   : > { %926 = vmatprep.mubr.f32.mxu1 %v257_v32  ;;  %1006 = vmatprep.subr.bf16.mxu1 %v1005_v59 }
  0x28   : > { %979 = vmatprep.mubr.f32.mxu0 %v1139_v28 }
  0x29   : > { %927 = vmatmul.mubr.f32.gmra.mrb[2].mxu1 %v267_v39  ;;  %980 = vmatmul.mubr.f32.vlgmr.msra.gmra.mrb[0].mxu0 %v1141_v29 }
  0x2a   : > { %1008 = vmatpush3.bf16.msra.mxu1 %v1005_v59  ;;  %937 = vmatprep.mubr.f32.mxu1 %v238_v36 }
  0x2b   : > { %982 = vmatprep.mubr.f32.mxu0 %v257_v32 }
  0x2d   : > { %938 = vmatmul.mubr.f32.vlgmr.msra.gmra.mrb[0].mxu1 %v248_v37  ;;  %983 = vmatmul.mubr.f32.gmra.mrb[2].mxu0 %v267_v39 }
  0x2e   : > { %940 = vmatprep.mubr.f32.mxu1 %v258_v40 }
  0x31   : > { %941 = vmatmul.mubr.f32.gmra.mrb[2].mxu1 %v268_v43 }
  0xfc   : > { %v981_v60 = vpop.f32.mrb[0].mxu0 }
  0xfd   : > { %v760_v61 = vpop.f32.mrb[1].mxu0 }
 0x100   : > { %v939_v62 = vpop.f32.mrb[0].mxu1  ;;  %v984_v63 = vpop.f32.mrb[2].mxu0 }
 0x101   : > { %v1033_v0 = vadd.f32 %v981_v60, %v939_v62  ;;  %v462_v1 = vpop.f32.mrb[1].mxu1  ;;  %v772_v2 = vpop.f32.mrb[3].mxu0 }
 0x102   : > { %v1034_v3 = vadd.f32 %v760_v61, %v462_v1 }
 0x103   : > { %783 = vst [vmem:[%s145_s26 + $0x8] sm:$0xff] %v1033_v0 }
 0x104   : > { %782 = vst [vmem:[%s145_s26] sm:$0xff] %v1034_v3  ;;  %v942_v4 = vpop.f32.mrb[2].mxu1 }
 0x105   : > { %v1035_v5 = vadd.f32 %v984_v63, %v942_v4  ;;  %v476_v6 = vpop.f32.mrb[3].mxu1 }
 0x106   : > { %v1036_v7 = vadd.f32 %v772_v2, %v476_v6 }
 0x107   : > { %785 = vst [vmem:[%s145_s26 + $0x18] sm:$0xff] %v1035_v5 }
 0x108   : > { %784 = vst [vmem:[%s145_s26 + $0x10] sm:$0xff] %v1036_v7 }
 0x109 PF: > { %s12_s9 = sadd.s32 1, %s1067_s9  }
 0x10a   : > { %p9_p4 = scmp.ge.s32.totalorder %s12_s9, 4  }
 0x10c   :  { %11 = sbr.rel (!%p9_p4) target bundleno = 1 (0x1), region = 58 }

</bundles_post_ra>
